<compile_context>
chip_gen: v5e
topology: v5e:2x2
jax: 0.10.0
libtpu: 0.0.40
codegen_flags: <defaults>
</compile_context>

<pallas_src>
import functools

import jax
import jax.numpy as jnp
import numpy as np
from jax.experimental import pallas as pl
from jax.experimental.pallas import tpu as pltpu

_BN_EPS = 1e-5
_TAPS = tuple((kh, kw) for kh in range(3) for kw in range(3))


def _make_tap_masks(n, height, width):
    """(9, N*H*W) f32 validity mask per 3x3 tap.

    Zero where the source pixel (h+dh, w+dw) falls outside the image (implements
    the conv's 1-pixel zero padding).  Because the batch is folded into the lane
    axis, the same mask also zeroes exactly the lanes where the in-kernel roll
    would read across a sample boundary.
    """
    s = n * height * width
    hw = jnp.arange(s, dtype=jnp.int32) % (height * width)
    hh, ww = hw // width, hw % width
    rows = []
    for kh, kw in _TAPS:
        dh, dw = kh - 1, kw - 1
        valid = ((hh + dh >= 0) & (hh + dh < height) &
                 (ww + dw >= 0) & (ww + dw < width))
        rows.append(valid.astype(jnp.float32))
    return jnp.stack(rows, axis=0)


def _fold_conv_weight(w_oihw):
    """PyTorch OIHW (Cout, Cin, 3, 3) -> (Cout, 9*Cin) im2col weight.

    Column order is tap-major then input channel, matching _im2col_into's patch
    row order (no zero block-diagonal padding over the batch anymore).
    """
    cout, cin = int(w_oihw.shape[0]), int(w_oihw.shape[1])
    return jnp.transpose(w_oihw, (0, 2, 3, 1)).reshape(cout, 9 * cin)


def _im2col_into(patch_ref, act, mask_ref, chan, width):
    """Write the 3x3 im2col patch of `act` (chan, S) into patch_ref (9*chan, S).

    Tap t = kh*3+kw occupies sublane rows [t*chan, (t+1)*chan): `act` rolled along
    the lane axis by -(dh*W+dw) (XLU) times the precomputed validity mask (VPU).
    Writing into VMEM scratch keeps only one tap's vregs live at a time.
    """
    s = act.shape[1]
    for t, (kh, kw) in enumerate(_TAPS):
        dh, dw = kh - 1, kw - 1
        off = dh * width + dw
        if off == 0:
            patch_ref[t * chan:(t + 1) * chan, :] = act        # center tap: mask==1
        else:
            shifted = pltpu.roll(act, (-off) % s, axis=1)
            patch_ref[t * chan:(t + 1) * chan, :] = shifted * mask_ref[t:t + 1, :]


def _bn_relu(y, gamma, beta):
    """Training-mode BatchNorm2d (+ ReLU) on a (Cout, N*H*W) conv output.

    With the batch in the lane axis, per-channel statistics are one lane reduce
    per row.  Single-pass sum / sum-of-squares, biased variance, eps=1e-5.
    # TODO(synk): switch to a two-pass / Welford reduction before scaling to
    # activation magnitudes where E[x^2] - mean^2 cancellation matters.
    """
    cnt = float(y.shape[1])
    mean = jnp.sum(y, axis=1, keepdims=True) / cnt
    var = jnp.sum(y * y, axis=1, keepdims=True) / cnt - mean * mean
    scale = gamma * jax.lax.rsqrt(var + _BN_EPS)               # (Cout, 1)
    shift = beta - mean * scale
    return jnp.maximum(y * scale + shift, 0.0)


def _double_conv_kernel(x_ref, mask_ref, w1_ref, w2_ref, g1_ref, b1_ref,
                        g2_ref, b2_ref, o_ref, patch1_ref, patch2_ref,
                        *, cin, cout, width):
    x = x_ref[...]                                             # (Cin, N*H*W)

    # ---- block 1: conv3x3 (one MXU matmul over the im2col patch) => BN => ReLU
    _im2col_into(patch1_ref, x, mask_ref, cin, width)          # (9*Cin, S) scratch
    y1 = jnp.dot(w1_ref[...], patch1_ref[...],
                 preferred_element_type=jnp.float32)           # (Cout, S)
    a1 = _bn_relu(y1, g1_ref[...], b1_ref[...])                # stays in VMEM/vregs

    # ---- block 2 -----------------------------------------------------------
    _im2col_into(patch2_ref, a1, mask_ref, cout, width)        # (9*Cout, S) scratch
    y2 = jnp.dot(w2_ref[...], patch2_ref[...],
                 preferred_element_type=jnp.float32)
    o_ref[...] = _bn_relu(y2, g2_ref[...], b2_ref[...]).astype(o_ref.dtype)


def _full_spec(shape):
    return pl.BlockSpec(shape, lambda: (0,) * len(shape))


def double_conv_forward(x_nchw, params):
    """Forward of double_conv.  Input/output are NCHW f32, like PyTorch."""
    n, cin, height, width = map(int, x_nchw.shape)
    cout = int(params["w1"].shape[0])
    s = n * height * width

    # Batch folded into the lane axis: (N, Cin, H, W) -> (Cin, N*H*W).  The small
    # wrapper-side transpose (a few KiB here) buys a zero-padding-free weight
    # (K = 9*C, not 9*N*C), 512 dense lanes per vreg row, and trivial BN stats.
    x2d = jnp.transpose(x_nchw.astype(jnp.float32), (1, 0, 2, 3)).reshape(cin, s)

    masks = _make_tap_masks(n, height, width)                       # (9, S)
    wbig1 = _fold_conv_weight(params["w1"].astype(jnp.float32))     # (Cout, 9*Cin)
    wbig2 = _fold_conv_weight(params["w2"].astype(jnp.float32))     # (Cout, 9*Cout)
    g1 = params["g1"].reshape(cout, 1).astype(jnp.float32)
    be1 = params["be1"].reshape(cout, 1).astype(jnp.float32)
    g2 = params["g2"].reshape(cout, 1).astype(jnp.float32)
    be2 = params["be2"].reshape(cout, 1).astype(jnp.float32)
    # NOTE: conv biases params["b1"]/["b2"] are intentionally NOT fed to the kernel:
    # training-mode BN subtracts the per-channel batch mean, which cancels a
    # per-channel conv bias exactly (the reference below keeps them and matches).

    flops = (2 * cout * s * 9 * cin + 2 * cout * s * 9 * cout     # two matmuls
             + 10 * cout * s                                      # BN + ReLU
             + 2 * 8 * (cin + cout) * s)                          # mask multiplies
    bytes_accessed = 4 * (x2d.size + masks.size + wbig1.size + wbig2.size
                          + 4 * cout + cout * s)

    kernel = functools.partial(_double_conv_kernel, cin=cin, cout=cout, width=width)

    out2d = pl.pallas_call(
        kernel,
        out_shape=jax.ShapeDtypeStruct((cout, s), jnp.float32),
        in_specs=[
            _full_spec((cin, s)),
            _full_spec((9, s)),
            _full_spec((cout, 9 * cin)),
            _full_spec((cout, 9 * cout)),
            _full_spec((cout, 1)),
            _full_spec((cout, 1)),
            _full_spec((cout, 1)),
            _full_spec((cout, 1)),
        ],
        out_specs=_full_spec((cout, s)),
        scratch_shapes=[
            pltpu.VMEM((9 * cin, s), jnp.float32),    # block-1 im2col patch
            pltpu.VMEM((9 * cout, s), jnp.float32),   # block-2 im2col patch
        ],
        compiler_params=pltpu.CompilerParams(vmem_limit_bytes=32 * 1024 * 1024),
        cost_estimate=pl.CostEstimate(flops=int(flops), transcendentals=2 * cout,
                                      bytes_accessed=int(bytes_accessed)),
    )(x2d, masks, wbig1, wbig2, g1, be1, g2, be2)

    # (Cout, N*H*W) -> NCHW (tiny wrapper-side transpose).
    return jnp.transpose(out2d.reshape(cout, n, height, width), (1, 0, 2, 3))


def init_params(key, in_ch, out_ch):
    ks = jax.random.split(key, 8)
    # Conv weights in PyTorch OIHW layout (Cout, Cin, 3, 3).
    w1 = jax.random.normal(ks[0], (out_ch, in_ch, 3, 3), jnp.float32) * 0.1
    b1 = jax.random.normal(ks[1], (out_ch,), jnp.float32) * 0.1
    g1 = 1.0 + 0.1 * jax.random.normal(ks[2], (out_ch,), jnp.float32)
    be1 = 0.1 * jax.random.normal(ks[3], (out_ch,), jnp.float32)
    w2 = jax.random.normal(ks[4], (out_ch, out_ch, 3, 3), jnp.float32) * 0.1
    b2 = jax.random.normal(ks[5], (out_ch,), jnp.float32) * 0.1
    g2 = 1.0 + 0.1 * jax.random.normal(ks[6], (out_ch,), jnp.float32)
    be2 = 0.1 * jax.random.normal(ks[7], (out_ch,), jnp.float32)
    return dict(w1=w1, b1=b1, g1=g1, be1=be1, w2=w2, b2=b2, g2=g2, be2=be2)


def _reference_forward(x_nchw, params):
    """Pure-JAX reference (lax.conv + train-mode BN + ReLU), including conv bias."""
    def block(x, w, b, g, be):
        y = jax.lax.conv_general_dilated(
            x, w, window_strides=(1, 1), padding=((1, 1), (1, 1)),
            dimension_numbers=("NCHW", "OIHW", "NCHW"),
        ) + b[None, :, None, None]
        mean = jnp.mean(y, axis=(0, 2, 3), keepdims=True)
        var = jnp.mean((y - mean) ** 2, axis=(0, 2, 3), keepdims=True)
        y = (y - mean) * jax.lax.rsqrt(var + _BN_EPS)
        y = y * g[None, :, None, None] + be[None, :, None, None]
        return jnp.maximum(y, 0.0)

    x = block(x_nchw, params["w1"], params["b1"], params["g1"], params["be1"])
    x = block(x, params["w2"], params["b2"], params["g2"], params["be2"])
    return x


if __name__ == "__main__":
    key = jax.random.PRNGKey(0)
    k_x, k_p = jax.random.split(key)

    N, IN_CH, OUT_CH, H, W = 2, 4, 8, 16, 16
    x = jax.random.normal(k_x, (N, IN_CH, H, W), jnp.float32)   # NCHW, like PyTorch
    params = init_params(k_p, IN_CH, OUT_CH)

    fwd = jax.jit(double_conv_forward)
    out = jax.block_until_ready(fwd(x, params))
    assert out.shape == (N, OUT_CH, H, W), out.shape

    ref = jax.block_until_ready(_reference_forward(x, params))
    np.testing.assert_allclose(np.asarray(out), np.asarray(ref), rtol=1e-4, atol=1e-4)

    print("KERNEL_OK")
</pallas_src>

<mosaic_0001>
module attributes {stable_mosaic.version = 11 : i64} {
  func.func @_double_conv_kernel(%arg0: memref<4x512xf32, #tpu.memory_space<vmem>>, %arg1: memref<9x512xf32, #tpu.memory_space<vmem>>, %arg2: memref<8x36xf32, #tpu.memory_space<vmem>>, %arg3: memref<8x72xf32, #tpu.memory_space<vmem>>, %arg4: memref<8x1xf32, #tpu.memory_space<vmem>>, %arg5: memref<8x1xf32, #tpu.memory_space<vmem>>, %arg6: memref<8x1xf32, #tpu.memory_space<vmem>>, %arg7: memref<8x1xf32, #tpu.memory_space<vmem>>, %arg8: memref<8x512xf32, #tpu.memory_space<vmem>>, %arg9: memref<36x512xf32, #tpu.memory_space<vmem>>, %arg10: memref<72x512xf32, #tpu.memory_space<vmem>>) attributes {dimension_semantics = [], scalar_prefetch = 0 : i64, scratch_operands = 2 : i64, tpu.core_type = #tpu.core_type<tc>} {
    %c0 = arith.constant 0 : index
    %c0_0 = arith.constant 0 : index
    %0 = vector.load %arg0[%c0, %c0_0] : memref<4x512xf32, #tpu.memory_space<vmem>>, vector<4x512xf32>
    %c17_i32 = arith.constant 17 : i32
    %1 = tpu.dynamic_rotate %0 by %c17_i32 dim 1 : vector<4x512xf32>, i32 -> vector<4x512xf32>
    %c0_1 = arith.constant 0 : index
    %c0_2 = arith.constant 0 : index
    %2 = vector.load %arg1[%c0_1, %c0_2] : memref<9x512xf32, #tpu.memory_space<vmem>>, vector<1x512xf32>
    %3 = vector.broadcast %2 : vector<1x512xf32> to vector<4x512xf32>
    %4 = arith.mulf %1, %3 : vector<4x512xf32>
    %c0_3 = arith.constant 0 : index
    %c0_4 = arith.constant 0 : index
    %5 = vector.load %arg9[%c0_3, %c0_4] : memref<36x512xf32, #tpu.memory_space<vmem>>, vector<4x512xf32>
    tpu.vector_store %arg9[%c0_3, %c0_4], %4 {strides = array<i32>} : memref<36x512xf32, #tpu.memory_space<vmem>>, vector<4x512xf32>,
    %c16_i32 = arith.constant 16 : i32
    %6 = tpu.dynamic_rotate %0 by %c16_i32 dim 1 : vector<4x512xf32>, i32 -> vector<4x512xf32>
    %c1 = arith.constant 1 : index
    %c0_5 = arith.constant 0 : index
    %7 = vector.load %arg1[%c1, %c0_5] : memref<9x512xf32, #tpu.memory_space<vmem>>, vector<1x512xf32>
    %8 = vector.broadcast %7 : vector<1x512xf32> to vector<4x512xf32>
    %9 = arith.mulf %6, %8 : vector<4x512xf32>
    %c4 = arith.constant 4 : index
    %c0_6 = arith.constant 0 : index
    %10 = vector.load %arg9[%c4, %c0_6] : memref<36x512xf32, #tpu.memory_space<vmem>>, vector<4x512xf32>
    tpu.vector_store %arg9[%c4, %c0_6], %9 {strides = array<i32>} : memref<36x512xf32, #tpu.memory_space<vmem>>, vector<4x512xf32>,
    %c15_i32 = arith.constant 15 : i32
    %11 = tpu.dynamic_rotate %0 by %c15_i32 dim 1 : vector<4x512xf32>, i32 -> vector<4x512xf32>
    %c2 = arith.constant 2 : index
    %c0_7 = arith.constant 0 : index
    %12 = vector.load %arg1[%c2, %c0_7] : memref<9x512xf32, #tpu.memory_space<vmem>>, vector<1x512xf32>
    %13 = vector.broadcast %12 : vector<1x512xf32> to vector<4x512xf32>
    %14 = arith.mulf %11, %13 : vector<4x512xf32>
    %c8 = arith.constant 8 : index
    %c0_8 = arith.constant 0 : index
    %15 = vector.load %arg9[%c8, %c0_8] : memref<36x512xf32, #tpu.memory_space<vmem>>, vector<4x512xf32>
    tpu.vector_store %arg9[%c8, %c0_8], %14 {strides = array<i32>} : memref<36x512xf32, #tpu.memory_space<vmem>>, vector<4x512xf32>,
    %c1_i32 = arith.constant 1 : i32
    %16 = tpu.dynamic_rotate %0 by %c1_i32 dim 1 : vector<4x512xf32>, i32 -> vector<4x512xf32>
    %c3 = arith.constant 3 : index
    %c0_9 = arith.constant 0 : index
    %17 = vector.load %arg1[%c3, %c0_9] : memref<9x512xf32, #tpu.memory_space<vmem>>, vector<1x512xf32>
    %18 = vector.broadcast %17 : vector<1x512xf32> to vector<4x512xf32>
    %19 = arith.mulf %16, %18 : vector<4x512xf32>
    %c12 = arith.constant 12 : index
    %c0_10 = arith.constant 0 : index
    %20 = vector.load %arg9[%c12, %c0_10] : memref<36x512xf32, #tpu.memory_space<vmem>>, vector<4x512xf32>
    tpu.vector_store %arg9[%c12, %c0_10], %19 {strides = array<i32>} : memref<36x512xf32, #tpu.memory_space<vmem>>, vector<4x512xf32>,
    %c16 = arith.constant 16 : index
    %c0_11 = arith.constant 0 : index
    %21 = vector.load %arg9[%c16, %c0_11] : memref<36x512xf32, #tpu.memory_space<vmem>>, vector<4x512xf32>
    tpu.vector_store %arg9[%c16, %c0_11], %0 {strides = array<i32>} : memref<36x512xf32, #tpu.memory_space<vmem>>, vector<4x512xf32>,
    %c511_i32 = arith.constant 511 : i32
    %22 = tpu.dynamic_rotate %0 by %c511_i32 dim 1 : vector<4x512xf32>, i32 -> vector<4x512xf32>
    %c5 = arith.constant 5 : index
    %c0_12 = arith.constant 0 : index
    %23 = vector.load %arg1[%c5, %c0_12] : memref<9x512xf32, #tpu.memory_space<vmem>>, vector<1x512xf32>
    %24 = vector.broadcast %23 : vector<1x512xf32> to vector<4x512xf32>
    %25 = arith.mulf %22, %24 : vector<4x512xf32>
    %c20 = arith.constant 20 : index
    %c0_13 = arith.constant 0 : index
    %26 = vector.load %arg9[%c20, %c0_13] : memref<36x512xf32, #tpu.memory_space<vmem>>, vector<4x512xf32>
    tpu.vector_store %arg9[%c20, %c0_13], %25 {strides = array<i32>} : memref<36x512xf32, #tpu.memory_space<vmem>>, vector<4x512xf32>,
    %c497_i32 = arith.constant 497 : i32
    %27 = tpu.dynamic_rotate %0 by %c497_i32 dim 1 : vector<4x512xf32>, i32 -> vector<4x512xf32>
    %c6 = arith.constant 6 : index
    %c0_14 = arith.constant 0 : index
    %28 = vector.load %arg1[%c6, %c0_14] : memref<9x512xf32, #tpu.memory_space<vmem>>, vector<1x512xf32>
    %29 = vector.broadcast %28 : vector<1x512xf32> to vector<4x512xf32>
    %30 = arith.mulf %27, %29 : vector<4x512xf32>
    %c24 = arith.constant 24 : index
    %c0_15 = arith.constant 0 : index
    %31 = vector.load %arg9[%c24, %c0_15] : memref<36x512xf32, #tpu.memory_space<vmem>>, vector<4x512xf32>
    tpu.vector_store %arg9[%c24, %c0_15], %30 {strides = array<i32>} : memref<36x512xf32, #tpu.memory_space<vmem>>, vector<4x512xf32>,
    %c496_i32 = arith.constant 496 : i32
    %32 = tpu.dynamic_rotate %0 by %c496_i32 dim 1 : vector<4x512xf32>, i32 -> vector<4x512xf32>
    %c7 = arith.constant 7 : index
    %c0_16 = arith.constant 0 : index
    %33 = vector.load %arg1[%c7, %c0_16] : memref<9x512xf32, #tpu.memory_space<vmem>>, vector<1x512xf32>
    %34 = vector.broadcast %33 : vector<1x512xf32> to vector<4x512xf32>
    %35 = arith.mulf %32, %34 : vector<4x512xf32>
    %c28 = arith.constant 28 : index
    %c0_17 = arith.constant 0 : index
    %36 = vector.load %arg9[%c28, %c0_17] : memref<36x512xf32, #tpu.memory_space<vmem>>, vector<4x512xf32>
    tpu.vector_store %arg9[%c28, %c0_17], %35 {strides = array<i32>} : memref<36x512xf32, #tpu.memory_space<vmem>>, vector<4x512xf32>,
    %c495_i32 = arith.constant 495 : i32
    %37 = tpu.dynamic_rotate %0 by %c495_i32 dim 1 : vector<4x512xf32>, i32 -> vector<4x512xf32>
    %c8_18 = arith.constant 8 : index
    %c0_19 = arith.constant 0 : index
    %38 = vector.load %arg1[%c8_18, %c0_19] : memref<9x512xf32, #tpu.memory_space<vmem>>, vector<1x512xf32>
    %39 = vector.broadcast %38 : vector<1x512xf32> to vector<4x512xf32>
    %40 = arith.mulf %37, %39 : vector<4x512xf32>
    %c32 = arith.constant 32 : index
    %c0_20 = arith.constant 0 : index
    %41 = vector.load %arg9[%c32, %c0_20] : memref<36x512xf32, #tpu.memory_space<vmem>>, vector<4x512xf32>
    tpu.vector_store %arg9[%c32, %c0_20], %40 {strides = array<i32>} : memref<36x512xf32, #tpu.memory_space<vmem>>, vector<4x512xf32>,
    %c0_21 = arith.constant 0 : index
    %c0_22 = arith.constant 0 : index
    %42 = vector.load %arg2[%c0_21, %c0_22] : memref<8x36xf32, #tpu.memory_space<vmem>>, vector<8x36xf32>
    %c0_23 = arith.constant 0 : index
    %c0_24 = arith.constant 0 : index
    %43 = vector.load %arg9[%c0_23, %c0_24] : memref<36x512xf32, #tpu.memory_space<vmem>>, vector<36x512xf32>
    %cst = arith.constant dense<0.000000e+00> : vector<8x512xf32>
    %44 = tpu.matmul %42, %43, %cst {dimension_numbers = #tpu.dot_dimension_numbers<[1], [0], [0], [1], [0, 0, 1, 1], [], []>} : vector<8x36xf32>, vector<36x512xf32>, vector<8x512xf32> -> vector<8x512xf32>
    %c0_25 = arith.constant 0 : index
    %c0_26 = arith.constant 0 : index
    %45 = vector.load %arg4[%c0_25, %c0_26] : memref<8x1xf32, #tpu.memory_space<vmem>>, vector<8x1xf32>
    %c0_27 = arith.constant 0 : index
    %c0_28 = arith.constant 0 : index
    %46 = vector.load %arg5[%c0_27, %c0_28] : memref<8x1xf32, #tpu.memory_space<vmem>>, vector<8x1xf32>
    %cst_29 = arith.constant dense<0.000000e+00> : vector<8xf32>
    %47 = vector.multi_reduction <add>, %44, %cst_29 [1] : vector<8x512xf32> to vector<8xf32>
    %48 = vector.shape_cast %47 : vector<8xf32> to vector<8x1xf32>
    %cst_30 = arith.constant 5.120000e+02 : f32
    %49 = vector.broadcast %cst_30 : f32 to vector<8x1xf32>
    %50 = arith.divf %48, %49 : vector<8x1xf32>
    %51 = arith.mulf %44, %44 : vector<8x512xf32>
    %cst_31 = arith.constant dense<0.000000e+00> : vector<8xf32>
    %52 = vector.multi_reduction <add>, %51, %cst_31 [1] : vector<8x512xf32> to vector<8xf32>
    %53 = vector.shape_cast %52 : vector<8xf32> to vector<8x1xf32>
    %cst_32 = arith.constant 5.120000e+02 : f32
    %54 = vector.broadcast %cst_32 : f32 to vector<8x1xf32>
    %55 = arith.divf %53, %54 : vector<8x1xf32>
    %56 = arith.mulf %50, %50 : vector<8x1xf32>
    %57 = arith.subf %55, %56 : vector<8x1xf32>
    %cst_33 = arith.constant 9.99999974E-6 : f32
    %58 = vector.broadcast %cst_33 : f32 to vector<8x1xf32>
    %59 = arith.addf %57, %58 : vector<8x1xf32>
    %60 = math.rsqrt %59 : vector<8x1xf32>
    %61 = arith.mulf %45, %60 : vector<8x1xf32>
    %62 = arith.mulf %50, %61 : vector<8x1xf32>
    %63 = arith.subf %46, %62 : vector<8x1xf32>
    %64 = vector.broadcast %61 : vector<8x1xf32> to vector<8x512xf32>
    %65 = arith.mulf %44, %64 : vector<8x512xf32>
    %66 = vector.broadcast %63 : vector<8x1xf32> to vector<8x512xf32>
    %67 = arith.addf %65, %66 : vector<8x512xf32>
    %cst_34 = arith.constant 0.000000e+00 : f32
    %68 = vector.broadcast %cst_34 : f32 to vector<8x512xf32>
    %69 = arith.maximumf %67, %68 : vector<8x512xf32>
    %c17_i32_35 = arith.constant 17 : i32
    %70 = tpu.dynamic_rotate %69 by %c17_i32_35 dim 1 : vector<8x512xf32>, i32 -> vector<8x512xf32>
    %c0_36 = arith.constant 0 : index
    %c0_37 = arith.constant 0 : index
    %71 = vector.load %arg1[%c0_36, %c0_37] : memref<9x512xf32, #tpu.memory_space<vmem>>, vector<1x512xf32>
    %72 = vector.broadcast %71 : vector<1x512xf32> to vector<8x512xf32>
    %73 = arith.mulf %70, %72 : vector<8x512xf32>
    %c0_38 = arith.constant 0 : index
    %c0_39 = arith.constant 0 : index
    %74 = vector.load %arg10[%c0_38, %c0_39] : memref<72x512xf32, #tpu.memory_space<vmem>>, vector<8x512xf32>
    tpu.vector_store %arg10[%c0_38, %c0_39], %73 {strides = array<i32>} : memref<72x512xf32, #tpu.memory_space<vmem>>, vector<8x512xf32>,
    %c16_i32_40 = arith.constant 16 : i32
    %75 = tpu.dynamic_rotate %69 by %c16_i32_40 dim 1 : vector<8x512xf32>, i32 -> vector<8x512xf32>
    %c1_41 = arith.constant 1 : index
    %c0_42 = arith.constant 0 : index
    %76 = vector.load %arg1[%c1_41, %c0_42] : memref<9x512xf32, #tpu.memory_space<vmem>>, vector<1x512xf32>
    %77 = vector.broadcast %76 : vector<1x512xf32> to vector<8x512xf32>
    %78 = arith.mulf %75, %77 : vector<8x512xf32>
    %c8_43 = arith.constant 8 : index
    %c0_44 = arith.constant 0 : index
    %79 = vector.load %arg10[%c8_43, %c0_44] : memref<72x512xf32, #tpu.memory_space<vmem>>, vector<8x512xf32>
    tpu.vector_store %arg10[%c8_43, %c0_44], %78 {strides = array<i32>} : memref<72x512xf32, #tpu.memory_space<vmem>>, vector<8x512xf32>,
    %c15_i32_45 = arith.constant 15 : i32
    %80 = tpu.dynamic_rotate %69 by %c15_i32_45 dim 1 : vector<8x512xf32>, i32 -> vector<8x512xf32>
    %c2_46 = arith.constant 2 : index
    %c0_47 = arith.constant 0 : index
    %81 = vector.load %arg1[%c2_46, %c0_47] : memref<9x512xf32, #tpu.memory_space<vmem>>, vector<1x512xf32>
    %82 = vector.broadcast %81 : vector<1x512xf32> to vector<8x512xf32>
    %83 = arith.mulf %80, %82 : vector<8x512xf32>
    %c16_48 = arith.constant 16 : index
    %c0_49 = arith.constant 0 : index
    %84 = vector.load %arg10[%c16_48, %c0_49] : memref<72x512xf32, #tpu.memory_space<vmem>>, vector<8x512xf32>
    tpu.vector_store %arg10[%c16_48, %c0_49], %83 {strides = array<i32>} : memref<72x512xf32, #tpu.memory_space<vmem>>, vector<8x512xf32>,
    %c1_i32_50 = arith.constant 1 : i32
    %85 = tpu.dynamic_rotate %69 by %c1_i32_50 dim 1 : vector<8x512xf32>, i32 -> vector<8x512xf32>
    %c3_51 = arith.constant 3 : index
    %c0_52 = arith.constant 0 : index
    %86 = vector.load %arg1[%c3_51, %c0_52] : memref<9x512xf32, #tpu.memory_space<vmem>>, vector<1x512xf32>
    %87 = vector.broadcast %86 : vector<1x512xf32> to vector<8x512xf32>
    %88 = arith.mulf %85, %87 : vector<8x512xf32>
    %c24_53 = arith.constant 24 : index
    %c0_54 = arith.constant 0 : index
    %89 = vector.load %arg10[%c24_53, %c0_54] : memref<72x512xf32, #tpu.memory_space<vmem>>, vector<8x512xf32>
    tpu.vector_store %arg10[%c24_53, %c0_54], %88 {strides = array<i32>} : memref<72x512xf32, #tpu.memory_space<vmem>>, vector<8x512xf32>,
    %c32_55 = arith.constant 32 : index
    %c0_56 = arith.constant 0 : index
    %90 = vector.load %arg10[%c32_55, %c0_56] : memref<72x512xf32, #tpu.memory_space<vmem>>, vector<8x512xf32>
    tpu.vector_store %arg10[%c32_55, %c0_56], %69 {strides = array<i32>} : memref<72x512xf32, #tpu.memory_space<vmem>>, vector<8x512xf32>,
    %c511_i32_57 = arith.constant 511 : i32
    %91 = tpu.dynamic_rotate %69 by %c511_i32_57 dim 1 : vector<8x512xf32>, i32 -> vector<8x512xf32>
    %c5_58 = arith.constant 5 : index
    %c0_59 = arith.constant 0 : index
    %92 = vector.load %arg1[%c5_58, %c0_59] : memref<9x512xf32, #tpu.memory_space<vmem>>, vector<1x512xf32>
    %93 = vector.broadcast %92 : vector<1x512xf32> to vector<8x512xf32>
    %94 = arith.mulf %91, %93 : vector<8x512xf32>
    %c40 = arith.constant 40 : index
    %c0_60 = arith.constant 0 : index
    %95 = vector.load %arg10[%c40, %c0_60] : memref<72x512xf32, #tpu.memory_space<vmem>>, vector<8x512xf32>
    tpu.vector_store %arg10[%c40, %c0_60], %94 {strides = array<i32>} : memref<72x512xf32, #tpu.memory_space<vmem>>, vector<8x512xf32>,
    %c497_i32_61 = arith.constant 497 : i32
    %96 = tpu.dynamic_rotate %69 by %c497_i32_61 dim 1 : vector<8x512xf32>, i32 -> vector<8x512xf32>
    %c6_62 = arith.constant 6 : index
    %c0_63 = arith.constant 0 : index
    %97 = vector.load %arg1[%c6_62, %c0_63] : memref<9x512xf32, #tpu.memory_space<vmem>>, vector<1x512xf32>
    %98 = vector.broadcast %97 : vector<1x512xf32> to vector<8x512xf32>
    %99 = arith.mulf %96, %98 : vector<8x512xf32>
    %c48 = arith.constant 48 : index
    %c0_64 = arith.constant 0 : index
    %100 = vector.load %arg10[%c48, %c0_64] : memref<72x512xf32, #tpu.memory_space<vmem>>, vector<8x512xf32>
    tpu.vector_store %arg10[%c48, %c0_64], %99 {strides = array<i32>} : memref<72x512xf32, #tpu.memory_space<vmem>>, vector<8x512xf32>,
    %c496_i32_65 = arith.constant 496 : i32
    %101 = tpu.dynamic_rotate %69 by %c496_i32_65 dim 1 : vector<8x512xf32>, i32 -> vector<8x512xf32>
    %c7_66 = arith.constant 7 : index
    %c0_67 = arith.constant 0 : index
    %102 = vector.load %arg1[%c7_66, %c0_67] : memref<9x512xf32, #tpu.memory_space<vmem>>, vector<1x512xf32>
    %103 = vector.broadcast %102 : vector<1x512xf32> to vector<8x512xf32>
    %104 = arith.mulf %101, %103 : vector<8x512xf32>
    %c56 = arith.constant 56 : index
    %c0_68 = arith.constant 0 : index
    %105 = vector.load %arg10[%c56, %c0_68] : memref<72x512xf32, #tpu.memory_space<vmem>>, vector<8x512xf32>
    tpu.vector_store %arg10[%c56, %c0_68], %104 {strides = array<i32>} : memref<72x512xf32, #tpu.memory_space<vmem>>, vector<8x512xf32>,
    %c495_i32_69 = arith.constant 495 : i32
    %106 = tpu.dynamic_rotate %69 by %c495_i32_69 dim 1 : vector<8x512xf32>, i32 -> vector<8x512xf32>
    %c8_70 = arith.constant 8 : index
    %c0_71 = arith.constant 0 : index
    %107 = vector.load %arg1[%c8_70, %c0_71] : memref<9x512xf32, #tpu.memory_space<vmem>>, vector<1x512xf32>
    %108 = vector.broadcast %107 : vector<1x512xf32> to vector<8x512xf32>
    %109 = arith.mulf %106, %108 : vector<8x512xf32>
    %c64 = arith.constant 64 : index
    %c0_72 = arith.constant 0 : index
    %110 = vector.load %arg10[%c64, %c0_72] : memref<72x512xf32, #tpu.memory_space<vmem>>, vector<8x512xf32>
    tpu.vector_store %arg10[%c64, %c0_72], %109 {strides = array<i32>} : memref<72x512xf32, #tpu.memory_space<vmem>>, vector<8x512xf32>,
    %c0_73 = arith.constant 0 : index
    %c0_74 = arith.constant 0 : index
    %111 = vector.load %arg3[%c0_73, %c0_74] : memref<8x72xf32, #tpu.memory_space<vmem>>, vector<8x72xf32>
    %c0_75 = arith.constant 0 : index
    %c0_76 = arith.constant 0 : index
    %112 = vector.load %arg10[%c0_75, %c0_76] : memref<72x512xf32, #tpu.memory_space<vmem>>, vector<72x512xf32>
    %cst_77 = arith.constant dense<0.000000e+00> : vector<8x512xf32>
    %113 = tpu.matmul %111, %112, %cst_77 {dimension_numbers = #tpu.dot_dimension_numbers<[1], [0], [0], [1], [0, 0, 1, 1], [], []>} : vector<8x72xf32>, vector<72x512xf32>, vector<8x512xf32> -> vector<8x512xf32>
    %c0_78 = arith.constant 0 : index
    %c0_79 = arith.constant 0 : index
    %114 = vector.load %arg6[%c0_78, %c0_79] : memref<8x1xf32, #tpu.memory_space<vmem>>, vector<8x1xf32>
    %c0_80 = arith.constant 0 : index
    %c0_81 = arith.constant 0 : index
    %115 = vector.load %arg7[%c0_80, %c0_81] : memref<8x1xf32, #tpu.memory_space<vmem>>, vector<8x1xf32>
    %cst_82 = arith.constant dense<0.000000e+00> : vector<8xf32>
    %116 = vector.multi_reduction <add>, %113, %cst_82 [1] : vector<8x512xf32> to vector<8xf32>
    %117 = vector.shape_cast %116 : vector<8xf32> to vector<8x1xf32>
    %cst_83 = arith.constant 5.120000e+02 : f32
    %118 = vector.broadcast %cst_83 : f32 to vector<8x1xf32>
    %119 = arith.divf %117, %118 : vector<8x1xf32>
    %120 = arith.mulf %113, %113 : vector<8x512xf32>
    %cst_84 = arith.constant dense<0.000000e+00> : vector<8xf32>
    %121 = vector.multi_reduction <add>, %120, %cst_84 [1] : vector<8x512xf32> to vector<8xf32>
    %122 = vector.shape_cast %121 : vector<8xf32> to vector<8x1xf32>
    %cst_85 = arith.constant 5.120000e+02 : f32
    %123 = vector.broadcast %cst_85 : f32 to vector<8x1xf32>
    %124 = arith.divf %122, %123 : vector<8x1xf32>
    %125 = arith.mulf %119, %119 : vector<8x1xf32>
    %126 = arith.subf %124, %125 : vector<8x1xf32>
    %cst_86 = arith.constant 9.99999974E-6 : f32
    %127 = vector.broadcast %cst_86 : f32 to vector<8x1xf32>
    %128 = arith.addf %126, %127 : vector<8x1xf32>
    %129 = math.rsqrt %128 : vector<8x1xf32>
    %130 = arith.mulf %114, %129 : vector<8x1xf32>
    %131 = arith.mulf %119, %130 : vector<8x1xf32>
    %132 = arith.subf %115, %131 : vector<8x1xf32>
    %133 = vector.broadcast %130 : vector<8x1xf32> to vector<8x512xf32>
    %134 = arith.mulf %113, %133 : vector<8x512xf32>
    %135 = vector.broadcast %132 : vector<8x1xf32> to vector<8x512xf32>
    %136 = arith.addf %134, %135 : vector<8x512xf32>
    %cst_87 = arith.constant 0.000000e+00 : f32
    %137 = vector.broadcast %cst_87 : f32 to vector<8x512xf32>
    %138 = arith.maximumf %136, %137 : vector<8x512xf32>
    %c0_88 = arith.constant 0 : index
    %c0_89 = arith.constant 0 : index
    %139 = vector.load %arg8[%c0_88, %c0_89] : memref<8x512xf32, #tpu.memory_space<vmem>>, vector<8x512xf32>
    tpu.vector_store %arg8[%c0_88, %c0_89], %138 {strides = array<i32>} : memref<8x512xf32, #tpu.memory_space<vmem>>, vector<8x512xf32>,
    return
  }
}

</mosaic_0001>

<bundles_post_ra>
// kernel: double_conv_forward.1
= control target key start
LH: loop header
LB: loop body
LE: loop exit
PB: predicated region body
PF: predicated region fallthrough
CT: control target
= control target key end

     0   :  { %s1095_s9 = smov 17   ;;  %s1097_s10 = smov 15   ;;  %v52_v40 = vlaneseq  ;;  %vm466_vm8 = vcmask 1043456   ;;  %vm462_vm9 = vcmask 293888   ;;  %vm903_vm14 = vcmask 588800   ;;  %s1624_s0 = inlined_call_operand.vmem [shape: f32[4,512], index: 0, kind: input, shape index: {}]   ;;  %s1625_s1 = inlined_call_operand.vmem [shape: f32[9,512], index: 1, kind: input, shape index: {}]   ;;  %s1626_s2 = inlined_call_operand.vmem [shape: f32[8,36], index: 2, kind: input, shape index: {}]   ;;  %s1627_s4 = inlined_call_operand.vmem [shape: f32[8,1], index: 4, kind: input, shape index: {}]   ;;  %s1628_s5 = inlined_call_operand.vmem [shape: f32[8,1], index: 5, kind: input, shape index: {}]   ;;  %s1629_s3 = inlined_call_operand.vmem [shape: f32[8,72], index: 3, kind: input, shape index: {}]   ;;  %s1630_s6 = inlined_call_operand.vmem [shape: f32[8,1], index: 6, kind: input, shape index: {}]   ;;  %s1631_s7 = inlined_call_operand.vmem [shape: f32[8,1], index: 7, kind: input, shape index: {}]   ;;  %s1632_s8 = inlined_call_operand.vmem [shape: f32[8,512], index: 8, kind: output, shape index: {}]  }
   0x1   :  { %v1153_v0 = vld [vmem:[%s1624_s0] sm:$0xff]  ;;  %v1158_v1 = vld [vmem:[%s1624_s0 + $0x8] sm:$0xff]  ;;  %s1096_s0 = smov 16   ;;  %s1098_s11 = smov 1  }
   0x2   :  { %33 = vst [vmem:[#allocation1] ss:$2 sm:$0xff] %v1153_v0  ;;  %s1099_s12 = smov 127   ;;  %s1100_s13 = smov 113   ;;  %v1229_v42 = vand.u32 127, %v52_v40 }
   0x3   :  { %35 = vst [vmem:[#allocation1 + $0x10] ss:$2 sm:$0xff] %v1158_v1  ;;  %s1101_s14 = smov 112   ;;  %s1102_s15 = smov 111  }
   0x4   :  { %v1227_v41 = vld [vmem:[%s1625_s1] ss:$8 sm:$0xf]  ;;  %vm54_vm0 = vcmp.lt.s32.totalorder %v1229_v42, 17  ;;  %vm96_vm1 = vcmp.lt.s32.totalorder %v1229_v42, 16  ;;  %vm194_vm2 = vcmp.lt.s32.totalorder %v1229_v42, 1 }
   0x5   :  { %v63_v43 = vperm.slane %v1227_v41, 2  ;;  %v1242_v47 = vld [vmem:[%s1625_s1 + $0x1] ss:$8 sm:$0xf]  ;;  %vm151_vm3 = vcmp.lt.s32.totalorder %v1229_v42, 15  ;;  %vm264_vm4 = vcmp.lt.s32.totalorder %v1229_v42, 127 }
   0x6   :  { %v1053_v49 = vld [vmem:[%s1625_s1 + $0x3] ss:$8 sm:$0xf]  ;;  %v106_v50 = vperm.slane %v1242_v47, 2  ;;  %v107_v60 = vperm.slane %v1242_v47, 3  ;;  %vm362_vm5 = vcmp.lt.s32.totalorder %v1229_v42, 112 }
   0x7   :  { %v205_v51 = vperm.slane %v1053_v49, 3  ;;  %vm319_vm6 = vcmp.lt.s32.totalorder %v1229_v42, 113  ;;  %vm417_vm7 = vcmp.lt.s32.totalorder %v1229_v42, 111 }
   0x9   :  { %v37_v2 = vld.sshfl [vmem:[#allocation1 + $0x8] sm:$0xff pattern:$0x75316420]  ;;  %v1162_v3 = vld.sshfl [vmem:[#allocation1] sm:$0xff pattern:$0x75316420] }
   0xa   :  { %46 = vrot.lane.b32.xlu2 %v37_v2, %s1095_s9  ;;  %77 = vst [vmem:[#allocation1] ss:$2 sm:$0xff] %v1153_v0  ;;  %v38_v4 = vld.sshfl [vmem:[#allocation1 + $0x10] sm:$0xff pattern:$0x75316420] }
   0xb   :  { %v1166_v5 = vld.sshfl [vmem:[#allocation1 + $0x18] sm:$0xff pattern:$0x75316420]  ;;  %48 = vrot.lane.b32.xlu0 %v38_v4, %s1095_s9 }
   0xc   :  { %79 = vst [vmem:[#allocation1 + $0x10] ss:$2 sm:$0xff] %v1158_v1  ;;  %v1270_v2 = vld [vmem:[%s1625_s1 + $0x2] ss:$8 sm:$0xf] }
   0xd   :  { %v162_v4 = vperm.slane %v1270_v2, 3 }
  0x11   :  { %v81_v6 = vld.sshfl [vmem:[#allocation1 + $0x8] sm:$0xff pattern:$0x75316420]  ;;  %v1170_v7 = vld.sshfl [vmem:[#allocation1] sm:$0xff pattern:$0x75316420] }
  0x12   :  { %90 = vrot.lane.b32.xlu1 %v81_v6, %s1096_s0  ;;  %132 = vst [vmem:[#allocation1] ss:$2 sm:$0xff] %v1153_v0  ;;  %v202_v6 = vperm.slane %v1053_v49, 0 }
  0x13   :  { %v82_v8 = vld.sshfl [vmem:[#allocation1 + $0x10] sm:$0xff pattern:$0x75316420]  ;;  %v83_v9 = vld.sshfl [vmem:[#allocation1 + $0x18] sm:$0xff pattern:$0x75316420] }
  0x14   :  { %92 = vrot.lane.b32.xlu2 %v82_v8, %s1096_s0  ;;  %134 = vst [vmem:[#allocation1 + $0x10] ss:$2 sm:$0xff] %v1158_v1 }
  0x19   :  { %v136_v10 = vld.sshfl [vmem:[#allocation1 + $0x8] sm:$0xff pattern:$0x75316420]  ;;  %v1176_v11 = vld.sshfl [vmem:[#allocation1] sm:$0xff pattern:$0x75316420] }
  0x1a   :  { %94 = vrot.lane.b32.xlu1 %v83_v9, %s1096_s0  ;;  %145 = vrot.lane.b32.xlu0 %v136_v10, %s1097_s10  ;;  %175 = vst [vmem:[#allocation1] ss:$2 sm:$0xff] %v1153_v0 }
  0x1b   :  { %v137_v12 = vld.sshfl [vmem:[#allocation1 + $0x10] sm:$0xff pattern:$0x75316420]  ;;  %v138_v13 = vld.sshfl [vmem:[#allocation1 + $0x18] sm:$0xff pattern:$0x75316420] }
  0x1c   :  { %177 = vst [vmem:[#allocation1 + $0x10] ss:$2 sm:$0xff] %v1158_v1 }
  0x21   :  { %v179_v14 = vld.sshfl [vmem:[#allocation1 + $0x8] sm:$0xff pattern:$0x75316420]  ;;  %v178_v15 = vld.sshfl [vmem:[#allocation1] sm:$0xff pattern:$0x75316420] }
  0x22   :  { %147 = vrot.lane.b32.xlu1 %v137_v12, %s1097_s10  ;;  %186 = vrot.lane.b32.xlu0 %v178_v15, %s1098_s11  ;;  %230 = vst [vmem:[#allocation1] ss:$2 sm:$0xff] %v1153_v0 }
  0x23   :  { %v180_v16 = vld.sshfl [vmem:[#allocation1 + $0x10] sm:$0xff pattern:$0x75316420]  ;;  %v181_v17 = vld.sshfl [vmem:[#allocation1 + $0x18] sm:$0xff pattern:$0x75316420] }
  0x24   :  { %190 = vrot.lane.b32.xlu2 %v180_v16, %s1098_s11  ;;  %232 = vst [vmem:[#allocation1 + $0x10] ss:$2 sm:$0xff] %v1158_v1 }
  0x29   :  { %v233_v18 = vld.sshfl [vmem:[#allocation1] sm:$0xff pattern:$0x75316420]  ;;  %v234_v21 = vld.sshfl [vmem:[#allocation1 + $0x8] sm:$0xff pattern:$0x75316420] }
  0x2a   :  { %188 = vrot.lane.b32.xlu1 %v179_v14, %s1098_s11  ;;  %241 = vst [vmem:[#allocation2 + $0x8] sm:$0xf] %v233_v18  ;;  %v203_v18 = vperm.slane %v1053_v49, 1 }
  0x2b   :  { %v235_v19 = vld.sshfl [vmem:[#allocation1 + $0x10] sm:$0xff pattern:$0x75316420]  ;;  %v236_v20 = vld.sshfl [vmem:[#allocation1 + $0x18] sm:$0xff pattern:$0x75316420] }
  0x2c   :  { %192 = vrot.lane.b32.xlu2 %v181_v17, %s1098_s11  ;;  %243 = vst [vmem:[#allocation2 + $0x28] sm:$0xf] %v235_v19  ;;  %v204_v17 = vperm.slane %v1053_v49, 2  ;;  %v1054_v19 = vld [vmem:[%s1625_s1 + $0x5] ss:$8 sm:$0xf] }
  0x2d   :  { %244 = vst [vmem:[#allocation2 + $0x40] sm:$0xf] %v236_v20  ;;  %v274_v20 = vperm.slane %v1054_v19, 2  ;;  %v273_v49 = vperm.slane %v1054_v19, 1 }
  0x2e   :  { %247 = vst [vmem:[#allocation1 + $0x10] ss:$2 sm:$0xff] %v1158_v1 }
  0x2f   :  { %242 = vst [vmem:[#allocation2 + $0x88] sm:$0xf] %v234_v21 }
  0x30   :  { %245 = vst [vmem:[#allocation1] ss:$2 sm:$0xff] %v1153_v0 }
  0x34   :  { %149 = vrot.lane.b32.xlu2 %v138_v13, %s1097_s10 }
  0x35   :  { %v250_v22 = vld.sshfl [vmem:[#allocation1 + $0x10] sm:$0xff pattern:$0x75316420]  ;;  %v251_v23 = vld.sshfl [vmem:[#allocation1 + $0x18] sm:$0xff pattern:$0x75316420] }
  0x36   :  { %302 = vst [vmem:[#allocation1 + $0x10] ss:$2 sm:$0xff] %v1158_v1 }
  0x37   :  { %v248_v24 = vld.sshfl [vmem:[#allocation1] sm:$0xff pattern:$0x75316420]  ;;  %v249_v25 = vld.sshfl [vmem:[#allocation1 + $0x8] sm:$0xff pattern:$0x75316420] }
  0x38   :  { %256 = vrot.lane.b32.xlu0 %v248_v24, %s1099_s12  ;;  %300 = vst [vmem:[#allocation1] ss:$2 sm:$0xff] %v1153_v0 }
  0x3c   :  { %260 = vrot.lane.b32.xlu2 %v250_v22, %s1099_s12 }
  0x3d   :  { %v306_v26 = vld.sshfl [vmem:[#allocation1 + $0x18] sm:$0xff pattern:$0x75316420]  ;;  %v305_v27 = vld.sshfl [vmem:[#allocation1 + $0x10] sm:$0xff pattern:$0x75316420] }
  0x3e   :  { %317 = vrot.lane.b32.xlu1 %v306_v26, %s1100_s13  ;;  %345 = vst [vmem:[#allocation1 + $0x10] ss:$2 sm:$0xff] %v1158_v1 }
  0x3f   :  { %v303_v28 = vld.sshfl [vmem:[#allocation1] sm:$0xff pattern:$0x75316420]  ;;  %v304_v29 = vld.sshfl [vmem:[#allocation1 + $0x8] sm:$0xff pattern:$0x75316420] }
  0x40   :  { %258 = vrot.lane.b32.xlu0 %v249_v25, %s1099_s12  ;;  %343 = vst [vmem:[#allocation1] ss:$2 sm:$0xff] %v1153_v0 }
  0x44   :  { %262 = vrot.lane.b32.xlu2 %v251_v23, %s1099_s12 }
  0x45   :  { %v348_v30 = vld.sshfl [vmem:[#allocation1 + $0x10] sm:$0xff pattern:$0x75316420]  ;;  %v349_v31 = vld.sshfl [vmem:[#allocation1 + $0x18] sm:$0xff pattern:$0x75316420] }
  0x46   :  { %311 = vrot.lane.b32.xlu1 %v303_v28, %s1100_s13  ;;  %400 = vst [vmem:[#allocation1 + $0x10] ss:$2 sm:$0xff] %v1158_v1 }
  0x47   :  { %v346_v32 = vld.sshfl [vmem:[#allocation1] sm:$0xff pattern:$0x75316420]  ;;  %v347_v33 = vld.sshfl [vmem:[#allocation1 + $0x8] sm:$0xff pattern:$0x75316420] }
  0x48   :  { %315 = vrot.lane.b32.xlu0 %v305_v27, %s1100_s13  ;;  %398 = vst [vmem:[#allocation1] ss:$2 sm:$0xff] %v1153_v0 }
  0x4c   :  { %354 = vrot.lane.b32.xlu2 %v346_v32, %s1101_s14 }
  0x4d   :  { %v403_v34 = vld.sshfl [vmem:[#allocation1 + $0x10] sm:$0xff pattern:$0x75316420]  ;;  %v404_v35 = vld.sshfl [vmem:[#allocation1 + $0x18] sm:$0xff pattern:$0x75316420] }
  0x4e   :  { %313 = vrot.lane.b32.xlu1 %v304_v29, %s1100_s13 }
  0x4f   :  { %v401_v36 = vld.sshfl [vmem:[#allocation1] sm:$0xff pattern:$0x75316420]  ;;  %v402_v37 = vld.sshfl [vmem:[#allocation1 + $0x8] sm:$0xff pattern:$0x75316420] }
  0x50   :  { %358 = vrot.lane.b32.xlu0 %v348_v30, %s1101_s14 }
  0x54   :  { %356 = vrot.lane.b32.xlu2 %v347_v33, %s1101_s14  ;;  %v275_v33 = vperm.slane %v1054_v19, 3 }
  0x56   :  { %413 = vrot.lane.b32.xlu1 %v403_v34, %s1102_s15  ;;  %v1298_v34 = vld [vmem:[%s1625_s1 + $0x7] ss:$8 sm:$0xf] }
  0x58   :  { %360 = vrot.lane.b32.xlu0 %v349_v31, %s1101_s14 }
  0x5c   :  { %88 = vrot.lane.b32.xlu2 %v1170_v7, %s1096_s0 }
  0x5e   :  { %415 = vrot.lane.b32.xlu1 %v404_v35, %s1102_s15 }
  0x60   :  { %409 = vrot.lane.b32.xlu0 %v401_v36, %s1102_s15 }
  0x64   :  { %v1218_v38 = vpop.permute.xlu2 %46 }
  0x66   :  { %50 = vrot.lane.b32.xlu1 %v1166_v5, %s1095_s9  ;;  %v161_v5 = vperm.slane %v1270_v2, 2 }
  0x68   :  { %411 = vrot.lane.b32.xlu0 %v402_v37, %s1102_s15 }
  0x6e   :  { %44 = vrot.lane.b32.xlu1 %v1162_v3, %s1095_s9  ;;  %v93_v39 = vpop.permute.xlu2 %92 }
  0x70   :  { %143 = vrot.lane.b32.xlu0 %v1176_v11, %s1097_s10 }
  0x7d   :  { %v1233_v44 = vpop.permute.xlu0 %48 }
  0x7e   :  { %v191_v45 = vpop.permute.xlu2 %190  ;;  %v56_v46 = vsel %vm54_vm0, %v1218_v38, %v1233_v44 }
  0x7f   :  { %v71_v48 = vmul.f32 %v63_v43, %v56_v46 }
  0x81   :  { %75 = vst [vmem:[#allocation2 + $0x50] sm:$0xf] %v71_v48  ;;  %v272_v48 = vperm.slane %v1054_v19, 0 }
  0x84   :  { %v1250_v52 = vpop.permute.xlu1 %90 }
  0x85   :  { %v98_v53 = vsel %vm96_vm1, %v1250_v52, %v93_v39 }
  0x86   :  { %v193_v54 = vpop.permute.xlu2 %192  ;;  %v114_v55 = vmul.f32 %v106_v50, %v98_v53 }
  0x87   :  { %v195_v56 = vsel %vm194_vm2, %v191_v45, %v193_v54 }
  0x88   :  { %v213_v57 = vmul.f32 %v205_v51, %v195_v56  ;;  %v122_v58 = vrot.slane %v114_v55, 4  ;;  %v1055_v56 = vld [vmem:[%s1625_s1 + $0x6] ss:$8 sm:$0xf] }
  0x8a   :  { %v221_v59 = vrot.slane %v213_v57, 4  ;;  %130 = vst [vmem:[#allocation2 + $0x50] sm:$0xf0] %v122_v58 }
  0x8c   :  { %229 = vst [vmem:[#allocation2 + $0x80] sm:$0xf0] %v221_v59  ;;  %v1258_v61 = vpop.permute.xlu1 %94  ;;  %v1260_v62 = vpop.permute.xlu0 %145  ;;  %v104_v59 = vperm.slane %v1242_v47, 0 }
  0x8d   :  { %v97_v63 = vsel %vm96_vm1, %v93_v39, %v1258_v61  ;;  %v370_v39 = vperm.slane %v1298_v34, 0 }
  0x8e   :  { %v1265_v0 = vpop.permute.xlu2 %149  ;;  %v115_v1 = vmul.f32 %v107_v60, %v97_v63  ;;  %v105_v60 = vperm.slane %v1242_v47, 1 }
  0x90   :  { %v123_v3 = vrot.slane %v115_v1, 4 }
  0x92   :  { %131 = vst [vmem:[#allocation2 + $0x18] sm:$0xf0] %v123_v3  ;;  %v330_v3 = vperm.slane %v1055_v56, 3 }
  0x94   :  { %v148_v7 = vpop.permute.xlu1 %147  ;;  %v187_v8 = vpop.permute.xlu0 %186 }
  0x95   :  { %v152_v9 = vsel %vm151_vm3, %v148_v7, %v1265_v0  ;;  %v153_v10 = vsel %vm151_vm3, %v1260_v62, %v148_v7  ;;  %v198_v11 = vsel %vm194_vm2, %v193_v54, %v187_v8  ;;  %v329_v7 = vperm.slane %v1055_v56, 2 }
  0x96   :  { %v261_v12 = vpop.permute.xlu2 %260  ;;  %v170_v13 = vmul.f32 %v162_v4, %v152_v9  ;;  %v169_v14 = vmul.f32 %v161_v5, %v153_v10  ;;  %v210_v15 = vmul.f32 %v202_v6, %v198_v11 }
  0x98   :  { %174 = vst [vmem:[#allocation2 + $0x80] sm:$0xf] %v170_v13  ;;  %v218_v16 = vrot.slane %v210_v15, 4 }
  0x99   :  { %173 = vst [vmem:[#allocation2 + $0x78] sm:$0xf] %v169_v14 }
  0x9a   :  { %226 = vst [vmem:[#allocation2 + $0x30] sm:$0xf0] %v218_v16  ;;  %v328_v16 = vperm.slane %v1055_v56, 1 }
  0x9c   :  { %v189_v21 = vpop.permute.xlu1 %188 }
  0x9d   :  { %v196_v22 = vsel %vm194_vm2, %v189_v21, %v191_v45  ;;  %v197_v23 = vsel %vm194_vm2, %v187_v8, %v189_v21 }
  0x9e   :  { %v263_v24 = vpop.permute.xlu2 %262  ;;  %v212_v25 = vmul.f32 %v204_v17, %v196_v22  ;;  %v211_v26 = vmul.f32 %v203_v18, %v197_v23  ;;  %v371_v17 = vperm.slane %v1298_v34, 1 }
  0x9f   :  { %v265_v27 = vsel %vm264_vm4, %v261_v12, %v263_v24 }
  0xa0   :  { %v282_v28 = vmul.f32 %v274_v20, %v265_v27  ;;  %v220_v29 = vrot.slane %v212_v25, 4  ;;  %v219_v30 = vrot.slane %v211_v26, 4  ;;  %v372_v27 = vperm.slane %v1298_v34, 2 }
  0xa2   :  { %v290_v31 = vrot.slane %v282_v28, 4  ;;  %228 = vst [vmem:[#allocation2 + $0x78] sm:$0xf0] %v220_v29  ;;  %v373_v28 = vperm.slane %v1298_v34, 3 }
  0xa3   :  { %227 = vst [vmem:[#allocation2 + $0x68] sm:$0xf0] %v219_v30 }
  0xa4   :  { %298 = vst [vmem:[#allocation2 + $0x28] sm:$0xf0] %v290_v31 }
  0xa6   :  { %v1293_v32 = vpop.permute.xlu2 %354 }
  0xaa   :  { %v257_v35 = vpop.permute.xlu0 %256 }
  0xab   :  { %v268_v36 = vsel %vm264_vm4, %v263_v24, %v257_v35 }
  0xac   :  { %v283_v37 = vmul.f32 %v275_v33, %v268_v36 }
  0xae   :  { %v291_v40 = vrot.slane %v283_v37, 4  ;;  %v357_v43 = vpop.permute.xlu2 %356 }
  0xaf   :  { %v365_v45 = vsel %vm362_vm5, %v1293_v32, %v357_v43 }
  0xb0   :  { %299 = vst [vmem:[#allocation2 + $0x40] sm:$0xf0] %v291_v40  ;;  %v318_v46 = vpop.permute.xlu1 %317  ;;  %v378_v50 = vmul.f32 %v370_v39, %v365_v45 }
  0xb2   :  { %v259_v51 = vpop.permute.xlu0 %258  ;;  %v386_v53 = vrot.slane %v378_v50, 4 }
  0xb3   :  { %v266_v54 = vsel %vm264_vm4, %v259_v51, %v261_v12  ;;  %v267_v55 = vsel %vm264_vm4, %v257_v35, %v259_v51  ;;  %v1057_v35 = vld [vmem:[%s1625_s1 + $0x20] ss:$8 sm:$0xf]  ;;  %v64_v51 = vperm.slane %v1227_v41, 3 }
  0xb4   :  { %v280_v57 = vmul.f32 %v272_v48, %v267_v55  ;;  %v281_v58 = vmul.f32 %v273_v49, %v266_v54  ;;  %394 = vst [vmem:[#allocation2 + $0x58] sm:$0xf0] %v386_v53  ;;  %v427_v34 = vperm.slane %v1057_v35, 2  ;;  %v428_v45 = vperm.slane %v1057_v35, 3 }
  0xb5   :  { %v425_v54 = vperm.slane %v1057_v35, 0  ;;  %v426_v55 = vperm.slane %v1057_v35, 1 }
  0xb6   :  { %v288_v63 = vrot.slane %v280_v57, 4  ;;  %v289_v1 = vrot.slane %v281_v58, 4  ;;  %v89_v4 = vpop.permute.xlu2 %88 }
  0xb7   :  { %v99_v5 = vsel %vm96_vm1, %v89_v4, %v1250_v52  ;;  %v100_v6 = vsel %vm96_vm1, %v1258_v61, %v89_v4  ;;  %v327_v61 = vperm.slane %v1055_v56, 0 }
  0xb8   :  { %296 = vst [vmem:[#allocation2 + $0x8] sm:$0xf0] %v288_v63  ;;  %v312_v8 = vpop.permute.xlu1 %311  ;;  %v112_v9 = vmul.f32 %v104_v59, %v100_v6  ;;  %v113_v10 = vmul.f32 %v105_v60, %v99_v5  ;;  %v62_v6 = vperm.slane %v1227_v41, 1 }
  0xb9   :  { %297 = vst [vmem:[#allocation2 + $0x88] sm:$0xf0] %v289_v1  ;;  %v323_v47 = vsel %vm319_vm6, %v318_v46, %v312_v8 }
  0xba   :  { %v316_v11 = vpop.permute.xlu0 %315  ;;  %v338_v12 = vmul.f32 %v330_v3, %v323_v47  ;;  %v120_v13 = vrot.slane %v112_v9, 4  ;;  %v121_v52 = vrot.slane %v113_v10, 4  ;;  %v159_v10 = vperm.slane %v1270_v2, 0 }
  0xbb   :  { %v320_v14 = vsel %vm319_vm6, %v316_v11, %v318_v46  ;;  %v160_v47 = vperm.slane %v1270_v2, 1 }
  0xbc   :  { %v337_v15 = vmul.f32 %v329_v7, %v320_v14  ;;  %342 = vst [vmem:[#allocation2 + $0x60] sm:$0xf] %v338_v12  ;;  %v448_v14 = vld [vmem:[#allocation2 + $0x78] sm:$0xff] }
  0xbd   :  { %128 = vst [vmem:[#allocation2] sm:$0xf0] %v120_v13  ;;  %v453_v13 = vld [vmem:[#allocation2 + $0x40] sm:$0xff] }
  0xbe   :  { %341 = vst [vmem:[#allocation2 + $0x98] sm:$0xf] %v337_v15 }
  0xbf   :  { %129 = vst [vmem:[#allocation2 + $0x38] sm:$0xf0] %v121_v52 }
  0xc0   :  { %v314_v18 = vpop.permute.xlu1 %313 }
  0xc1   :  { %v321_v19 = vsel %vm319_vm6, %v314_v18, %v316_v11  ;;  %v322_v20 = vsel %vm319_vm6, %v312_v8, %v314_v18  ;;  %v452_v8 = vld [vmem:[#allocation2 + $0x28] sm:$0xff] }
  0xc2   :  { %v359_v21 = vpop.permute.xlu0 %358  ;;  %v335_v22 = vmul.f32 %v327_v61, %v322_v20  ;;  %v336_v23 = vmul.f32 %v328_v16, %v321_v19  ;;  %v441_v61 = vld [vmem:[%s1626_s2] sm:$0xff]  ;;  %v449_v16 = vld [vmem:[#allocation2 + $0x80] sm:$0xff] }
  0xc3   :  { %v364_v24 = vsel %vm362_vm5, %v357_v43, %v359_v21 }
  0xc4   :  { %v379_v25 = vmul.f32 %v371_v17, %v364_v24  ;;  %339 = vst [vmem:[#allocation2 + $0x58] sm:$0xf] %v335_v22  ;;  %v444_v17 = vld [vmem:[#allocation2 + $0x50] sm:$0xff]  ;;  %v451_v24 = vld [vmem:[#allocation2 + $0x88] sm:$0xff] }
  0xc5   :  { %340 = vst [vmem:[#allocation2 + $0x10] sm:$0xf] %v336_v23  ;;  %v450_v23 = vld [vmem:[#allocation2 + $0x8] sm:$0xff] }
  0xc6   :  { %v387_v26 = vrot.slane %v379_v25, 4 }
  0xc8   :  { %395 = vst [vmem:[#allocation2 + $0x10] sm:$0xf0] %v387_v26  ;;  %v414_v29 = vpop.permute.xlu1 %413 }
  0xca   :  { %v361_v30 = vpop.permute.xlu0 %360 }
  0xcb   :  { %v363_v31 = vsel %vm362_vm5, %v359_v21, %v361_v30  ;;  %v366_v33 = vsel %vm362_vm5, %v361_v30, %v1293_v32 }
  0xcc   :  { %v380_v36 = vmul.f32 %v372_v27, %v363_v31  ;;  %v381_v37 = vmul.f32 %v373_v28, %v366_v33 }
  0xce   :  { %v388_v39 = vrot.slane %v380_v36, 4  ;;  %v389_v40 = vrot.slane %v381_v37, 4 }
  0xcf   :  { %v455_v22 = vld [vmem:[#allocation2 + $0x10] sm:$0xff] }
  0xd0   :  { %396 = vst [vmem:[#allocation2 + $0x98] sm:$0xf0] %v388_v39  ;;  %v416_v43 = vpop.permute.xlu1 %415 }
  0xd1   :  { %397 = vst [vmem:[#allocation2 + $0x60] sm:$0xf0] %v389_v40  ;;  %v418_v46 = vsel %vm417_vm7, %v414_v29, %v416_v43 }
  0xd2   :  { %v435_v48 = vmul.f32 %v427_v34, %v418_v46  ;;  %v410_v32 = vpop.permute.xlu0 %409 }
  0xd3   :  { %v421_v49 = vsel %vm417_vm7, %v416_v43, %v410_v32 }
  0xd4   :  { %439 = vst [vmem:[#allocation2 + $0x70] sm:$0xf] %v435_v48  ;;  %v436_v50 = vmul.f32 %v428_v45, %v421_v49 }
  0xd6   :  { %440 = vst [vmem:[#allocation2 + $0x90] sm:$0xf] %v436_v50 }
  0xd7   :  { %v456_v5 = vld [vmem:[#allocation2 + $0x98] sm:$0xff] }
  0xd8   :  { %v51_v53 = vpop.permute.xlu1 %50  ;;  %v457_v7 = vld [vmem:[#allocation2 + $0x60] sm:$0xff] }
  0xd9   :  { %v55_v56 = vsel %vm54_vm0, %v1233_v44, %v51_v53  ;;  %v61_v44 = vperm.slane %v1227_v41, 0 }
  0xda   :  { %v72_v57 = vmul.f32 %v64_v51, %v55_v56  ;;  %v412_v58 = vpop.permute.xlu0 %411 }
  0xdb   :  { %v419_v59 = vsel %vm417_vm7, %v412_v58, %v414_v29  ;;  %v420_v60 = vsel %vm417_vm7, %v410_v32, %v412_v58  ;;  %v460_v63 = vld [vmem:[#allocation2 + $0x70] sm:$0xf]  ;;  %v1103_v32 = vmov 512.0  }
  0xdc   :  { %76 = vst [vmem:[#allocation2 + $0x18] sm:$0xf] %v72_v57  ;;  %v433_v1 = vmul.f32 %v425_v54, %v420_v60  ;;  %v434_v3 = vmul.f32 %v426_v55, %v419_v59  ;;  %1062 = vmatpush.msk.msra.mxu2 %vm466_vm8, %v460_v63  ;;  %1089 = vrcp.f32 %v1103_v32  ;;  %v1104_v54 = vmov 0  }
  0xdd   :  { %v461_v4 = vld [vmem:[#allocation2 + $0x90] sm:$0xf]  ;;  %1087 = vset.pattern.permute.xlu1 %v1104_v54  ;;  %1088 = vset.pattern.permute.xlu0 %v1104_v54 }
  0xde   :  { %437 = vst [vmem:[#allocation2 + $0x20] sm:$0xf] %v433_v1  ;;  %1064 = vmatpush.msk.msra.mxu3 %vm466_vm8, %v461_v4  ;;  %531 = vmatpush.msra.mxu2 %v456_v5 }
  0xdf   :  { %438 = vst [vmem:[#allocation2 + $0x48] sm:$0xf] %v434_v3 }
  0xe0   :  { %551 = vmatpush.msra.mxu3 %v457_v7  ;;  %532 = vmatpush.msra.mxu2 %v452_v8  ;;  %v45_v9 = vpop.permute.xlu1 %44  ;;  %v559_v8 = vld [vmem:[%s1627_s4] sm:$0xff] }
  0xe1   :  { %v57_v11 = vsel %vm54_vm0, %v45_v9, %v1218_v38  ;;  %v58_v12 = vsel %vm54_vm0, %v51_v53, %v45_v9 }
  0xe2   :  { %v69_v41 = vmul.f32 %v61_v44, %v58_v12  ;;  %v70_v52 = vmul.f32 %v62_v6, %v57_v11  ;;  %552 = vmatpush.msra.mxu3 %v453_v13  ;;  %v144_v15 = vpop.permute.xlu0 %143  ;;  %533 = vmatpush.msra.mxu2 %v448_v14  ;;  %v1090_v49 = vpop.eup %1089  ;;  %v560_v12 = vld [vmem:[%s1628_s5] sm:$0xff] }
  0xe3   :  { %v154_v2 = vsel %vm151_vm3, %v144_v15, %v1260_v62  ;;  %v155_v38 = vsel %vm151_vm3, %v1265_v0, %v144_v15  ;;  %v445_v18 = vld [vmem:[#allocation2 + $0x18] sm:$0xff]  ;;  %v567_v50 = vmul.f32 512.0, %v1090_v49  ;;  %vm571_vm10 = vweird.f32 %v1090_v49 }
  0xe4   :  { %73 = vst [vmem:[#allocation2] sm:$0xf] %v69_v41  ;;  %v167_v19 = vmul.f32 %v159_v10, %v155_v38  ;;  %v168_v20 = vmul.f32 %v160_v47, %v154_v2  ;;  %553 = vmatpush.msra.mxu3 %v449_v16  ;;  %534 = vmatpush.msra.mxu2 %v444_v17  ;;  %v454_v0 = vld [vmem:[#allocation2 + $0x58] sm:$0xff] }
  0xe5   :  { %74 = vst [vmem:[#allocation2 + $0x38] sm:$0xf] %v70_v52  ;;  %v458_v21 = vld [vmem:[#allocation2 + $0x20] sm:$0xf]  ;;  %1063 = vmatmul.msk.f32.vlgmr.msra.gmra.mxu2 %vm462_vm9, %v441_v61  ;;  %v568_v51 = vsub.f32 1.0, %v567_v50 }
  0xe6   :  { %171 = vst [vmem:[#allocation2 + $0x30] sm:$0xf] %v167_v19  ;;  %1058 = vmatpush.msk.msra.mxu0 %vm466_vm8, %v458_v21  ;;  %v459_v62 = vld [vmem:[#allocation2 + $0x48] sm:$0xf]  ;;  %554 = vmatpush.msra.mxu3 %v445_v18 }
  0xe7   :  { %172 = vst [vmem:[#allocation2 + $0x68] sm:$0xf] %v168_v20  ;;  %1060 = vmatpush.msk.msra.mxu1 %vm466_vm8, %v459_v62  ;;  %1065 = vmatmul.msk.f32.vlgmr.msra.gmra.mxu3 %vm462_vm9, %v441_v61  ;;  %v569_v53 = vmul.f32 %v1090_v49, %v568_v51 }
  0xe8   :  { %491 = vmatpush.msra.mxu0 %v454_v0 }
  0xe9   :  { %511 = vmatpush.msra.mxu1 %v455_v22  ;;  %v570_v55 = vadd.f32 %v1090_v49, %v569_v53 }
  0xea   :  { %492 = vmatpush.msra.mxu0 %v450_v23  ;;  %v1072_v23 = vld [vmem:[%s1625_s1 + $0x20] ss:$8 sm:$0xf] }
  0xeb   :  { %512 = vmatpush.msra.mxu1 %v451_v24  ;;  %v442_v27 = vld [vmem:[#allocation2] sm:$0xff]  ;;  %v1388_v56 = vsel %vm571_vm10, %v1090_v49, %v570_v55 }
  0xec   :  { %v443_v28 = vld [vmem:[#allocation2 + $0x38] sm:$0xff] }
  0xed   :  { %v446_v25 = vld [vmem:[#allocation2 + $0x30] sm:$0xff] }
  0xee   :  { %493 = vmatpush.msra.mxu0 %v446_v25  ;;  %v447_v26 = vld [vmem:[#allocation2 + $0x68] sm:$0xff]  ;;  %v851_v25 = vperm.slane %v1072_v23, 1 }
  0xef   :  { %513 = vmatpush.msra.mxu1 %v447_v26 }
  0xf0   :  { %494 = vmatpush.msra.mxu0 %v442_v27 }
  0xf1   :  { %514 = vmatpush.msra.mxu1 %v443_v28  ;;  %1059 = vmatmul.msk.f32.vlgmr.msra.gmra.mxu0 %vm462_vm9, %v441_v61 }
  0xf2   :  { %1061 = vmatmul.msk.f32.vlgmr.msra.gmra.mxu1 %vm462_vm9, %v441_v61 }
 0x168   :  { %v536_v29 = vpop.f32.mrf.mxu2 }
 0x169   :  { %v576_v39 = vmul.f32 %v536_v29, %v536_v29 }
 0x16a   :  { %v556_v35 = vpop.f32.mrf.mxu3 }
 0x16b   :  { %v577_v34 = vmul.f32 %v556_v35, %v556_v35 }
 0x16e   :  { %v1383_v30 = vpop.f32.mrf.mxu0 }
 0x16f   :  { %v574_v31 = vmul.f32 %v1383_v30, %v1383_v30  ;;  %v516_v33 = vpop.f32.mrf.mxu1 }
 0x170   :  { %v561_v36 = vadd.f32 %v516_v33, %v1383_v30  ;;  %v575_v37 = vmul.f32 %v516_v33, %v516_v33 }
 0x172   :  { %v562_v40 = vadd.f32 %v561_v36, %v536_v29  ;;  %v578_v43 = vadd.f32 %v575_v37, %v574_v31  ;;  %v852_v31 = vperm.slane %v1072_v23, 2 }
 0x174   :  { %v563_v45 = vadd.f32 %v562_v40, %v556_v35  ;;  %v579_v46 = vadd.f32 %v578_v43, %v576_v39  ;;  %v1071_v39 = vld [vmem:[%s1625_s1 + $0x7] ss:$8 sm:$0xf]  ;;  %v1070_v40 = vld [vmem:[%s1625_s1 + $0x6] ss:$8 sm:$0xf] }
 0x175   :  { %v822_v43 = vperm.slane %v1071_v39, 2  ;;  %v791_v49 = vperm.slane %v1070_v40, 1 }
 0x176   :  { %564 = vadd.xlane.f32.xlu2 %v563_v45  ;;  %v580_v48 = vadd.f32 %v579_v46, %v577_v34  ;;  %v821_v34 = vperm.slane %v1071_v39, 1  ;;  %v1491_v46 = vld [vmem:[%s1625_s1 + $0x5] ss:$8 sm:$0xf] }
 0x178   :  { %581 = vadd.xlane.f32.xlu0 %v580_v48 }
 0x1e9   :  { %v565_v57 = vpop.xlane.xlu2 %564 }
 0x1ea   :  { %v573_v58 = vmul.f32 %v1388_v56, %v565_v57  ;;  %v761_v57 = vperm.slane %v1491_v46, 1 }
 0x1eb   :  { %v582_v59 = vpop.xlane.xlu0 %581 }
 0x1ec   :  { %v584_v60 = vmul.f32 %v573_v58, %v573_v58  ;;  %v583_v63 = vmul.f32 %v582_v59, %v1388_v56 }
 0x1ee   :  { %v585_v1 = vsub.f32 %v583_v63, %v584_v60  ;;  %v850_v63 = vperm.slane %v1072_v23, 0 }
 0x1f0   :  { %v586_v3 = vadd.f32 1e-05, %v585_v1  ;;  %v853_v1 = vperm.slane %v1072_v23, 3 }
 0x1f2   :  { %1091 = vrsqrt.f32 %v586_v3  ;;  %vm593_vm12 = vweird.f32 %v586_v3 }
 0x1f8   :  { %v1092_v4 = vpop.eup %1091 }
 0x1f9   :  { %v588_v5 = vmul.f32 %v1092_v4, %v586_v3  ;;  %vm594_vm11 = vweird.f32 %v1092_v4 }
 0x1fa   :  { %vm595_vm13 = vmor %vm593_vm12, %vm594_vm11 }
 0x1fb   :  { %v589_v44 = vmul.f32 %v1092_v4, %v588_v5 }
 0x1fd   :  { %v590_v6 = vmul.f32 0.5, %v589_v44 }
 0x1ff   :  { %v591_v7 = vsub.f32 1.5, %v590_v6 }
 0x201   :  { %v592_v9 = vmul.f32 %v1092_v4, %v591_v7 }
 0x203   :  { %v596_v10 = vsel %vm595_vm13, %v1092_v4, %v592_v9 }
 0x204   :  { %v597_v47 = vmul.f32 %v596_v10, %v559_v8  ;;  %v792_v8 = vperm.slane %v1070_v40, 2 }
 0x206   :  { %602 = vperm.xlu1 %1087, %v597_v47   ;;  %v598_v11 = vmul.f32 %v597_v47, %v573_v58 }
 0x208   :  { %v599_v13 = vsub.f32 %v560_v12, %v598_v11  ;;  %v820_v12 = vperm.slane %v1071_v39, 0 }
 0x20e   :  { %611 = vperm.xlu1 %1087, %v599_v13   ;;  %v823_v13 = vperm.slane %v1071_v39, 3 }
 0x278   :  { %v603_v14 = vpop.permute.xlu1 %602 }
 0x279   :  { %v607_v41 = vmul.f32 %v603_v14, %v536_v29  ;;  %v608_v52 = vmul.f32 %v603_v14, %v556_v35  ;;  %v606_v17 = vmul.f32 %v603_v14, %v516_v33  ;;  %v605_v20 = vmul.f32 %v603_v14, %v1383_v30 }
 0x280   :  { %v612_v15 = vpop.permute.xlu1 %611 }
 0x281   :  { %v616_v61 = vadd.f32 %v612_v15, %v607_v41  ;;  %v617_v2 = vadd.f32 %v612_v15, %v608_v52  ;;  %v615_v18 = vadd.f32 %v612_v15, %v606_v17  ;;  %v614_v21 = vadd.f32 %v612_v15, %v605_v20 }
 0x282   :  { %v790_v52 = vperm.slane %v1070_v40, 0  ;;  %v793_v15 = vperm.slane %v1070_v40, 3 }
 0x283   :  { %v1398_v38 = vmax.f32 %v616_v61, 0.0  ;;  %v1400_v16 = vmax.f32 %v617_v2, 0.0  ;;  %v1408_v19 = vmax.f32 %v615_v18, 0.0  ;;  %v1417_v62 = vmax.f32 %v614_v21, 0.0 }
 0x284   :  { %v1068_v21 = vld [vmem:[%s1625_s1 + $0x3] ss:$8 sm:$0xf] }
 0x285   :  { %812 = vrot.lane.b32.xlu2 %v1400_v16, %s1101_s14  ;;  %780 = vrot.lane.b32.xlu0 %v1398_v38, %s1100_s13 }
 0x286   :  { %840 = vrot.lane.b32.xlu1 %v1398_v38, %s1102_s15 }
 0x28d   :  { %750 = vrot.lane.b32.xlu0 %v1398_v38, %s1099_s12  ;;  %838 = vrot.lane.b32.xlu2 %v1408_v19, %s1102_s15 }
 0x28e   :  { %842 = vrot.lane.b32.xlu1 %v1400_v16, %s1102_s15 }
 0x295   :  { %808 = vrot.lane.b32.xlu0 %v1408_v19, %s1101_s14  ;;  %776 = vrot.lane.b32.xlu2 %v1417_v62, %s1100_s13 }
 0x296   :  { %810 = vrot.lane.b32.xlu1 %v1398_v38, %s1101_s14 }
 0x29d   :  { %714 = vrot.lane.b32.xlu0 %v1408_v19, %s1098_s11  ;;  %778 = vrot.lane.b32.xlu2 %v1408_v19, %s1100_s13 }
 0x29e   :  { %836 = vrot.lane.b32.xlu1 %v1417_v62, %s1102_s15 }
 0x2a5   :  { %684 = vrot.lane.b32.xlu0 %v1408_v19, %s1097_s10  ;;  %748 = vrot.lane.b32.xlu2 %v1408_v19, %s1099_s12 }
 0x2a6   :  { %782 = vrot.lane.b32.xlu1 %v1400_v16, %s1100_s13 }
 0x2ad   :  { %654 = vrot.lane.b32.xlu0 %v1408_v19, %s1096_s0  ;;  %718 = vrot.lane.b32.xlu2 %v1400_v16, %s1098_s11 }
 0x2ae   :  { %806 = vrot.lane.b32.xlu1 %v1417_v62, %s1101_s14 }
 0x2b5   :  { %712 = vrot.lane.b32.xlu0 %v1417_v62, %s1098_s11  ;;  %688 = vrot.lane.b32.xlu2 %v1400_v16, %s1097_s10 }
 0x2b6   :  { %752 = vrot.lane.b32.xlu1 %v1400_v16, %s1099_s12 }
 0x2bd   :  { %658 = vrot.lane.b32.xlu0 %v1400_v16, %s1096_s0  ;;  %626 = vrot.lane.b32.xlu2 %v1398_v38, %s1095_s9 }
 0x2be   :  { %746 = vrot.lane.b32.xlu1 %v1417_v62, %s1099_s12 }
 0x2c5   :  { %652 = vrot.lane.b32.xlu0 %v1417_v62, %s1096_s0  ;;  %628 = vrot.lane.b32.xlu2 %v1400_v16, %s1095_s9 }
 0x2c6   :  { %716 = vrot.lane.b32.xlu1 %v1398_v38, %s1098_s11 }
 0x2ce   :  { %686 = vrot.lane.b32.xlu1 %v1398_v38, %s1097_s10 }
 0x2d6   :  { %656 = vrot.lane.b32.xlu1 %v1398_v38, %s1096_s0 }
 0x2de   :  { %624 = vrot.lane.b32.xlu1 %v1408_v19, %s1095_s9 }
 0x2df   :  { %v1467_v0 = vpop.permute.xlu2 %812 }
 0x2e6   :  { %682 = vrot.lane.b32.xlu1 %v1417_v62, %s1097_s10 }
 0x2e7   :  { %v839_v22 = vpop.permute.xlu2 %838 }
 0x2ee   :  { %622 = vrot.lane.b32.xlu1 %v1417_v62, %s1095_s9 }
 0x2ef   :  { %v777_v24 = vpop.permute.xlu2 %776 }
 0x2f7   :  { %v781_v26 = vpop.permute.xlu0 %780  ;;  %v779_v30 = vpop.permute.xlu2 %778 }
 0x2f8   :  { %v841_v27 = vpop.permute.xlu1 %840  ;;  %v785_v50 = vsel %vm319_vm6, %v779_v30, %v781_v26  ;;  %v786_v61 = vsel %vm319_vm6, %v777_v24, %v779_v30 }
 0x2f9   :  { %v845_v28 = vsel %vm417_vm7, %v839_v22, %v841_v27  ;;  %v799_v59 = vmul.f32 %v791_v49, %v785_v50 }
 0x2fa   :  { %v859_v29 = vmul.f32 %v851_v25, %v845_v28  ;;  %v727_v25 = vperm.slane %v1068_v21, 1 }
 0x2fc   :  { %934 = vmatpush.msrb.mxu1 %v859_v29 }
 0x2ff   :  { %v1478_v33 = vpop.permute.xlu0 %750  ;;  %v1493_v48 = vpop.permute.xlu2 %748 }
 0x300   :  { %v843_v35 = vpop.permute.xlu1 %842  ;;  %v755_v58 = vsel %vm264_vm4, %v1493_v48, %v1478_v33 }
 0x301   :  { %v844_v36 = vsel %vm417_vm7, %v841_v27, %v843_v35  ;;  %v769_v60 = vmul.f32 %v761_v57, %v755_v58 }
 0x302   :  { %v860_v37 = vmul.f32 %v852_v31, %v844_v36  ;;  %v763_v36 = vperm.slane %v1491_v46, 3 }
 0x304   :  { %954 = vmatpush.msrb.mxu2 %v860_v37 }
 0x307   :  { %v809_v45 = vpop.permute.xlu0 %808  ;;  %v719_v27 = vpop.permute.xlu2 %718 }
 0x308   :  { %v811_v32 = vpop.permute.xlu1 %810 }
 0x309   :  { %v814_v51 = vsel %vm362_vm5, %v811_v32, %v1467_v0  ;;  %v815_v53 = vsel %vm362_vm5, %v809_v45, %v811_v32  ;;  %v728_v32 = vperm.slane %v1068_v21, 2 }
 0x30a   :  { %v829_v54 = vmul.f32 %v821_v34, %v815_v53  ;;  %v830_v55 = vmul.f32 %v822_v43, %v814_v51 }
 0x30c   :  { %935 = vmatpush.msrb.mxu1 %v829_v54  ;;  %955 = vmatpush.msrb.mxu2 %v830_v55 }
 0x30e   :  { %936 = vmatpush.msrb.mxu1 %v799_v59 }
 0x30f   :  { %v1507_v3 = vpop.permute.xlu0 %714  ;;  %v1547_v34 = vpop.permute.xlu2 %688 }
 0x310   :  { %937 = vmatpush.msrb.mxu1 %v769_v60  ;;  %v837_v4 = vpop.permute.xlu1 %836 }
 0x311   :  { %v846_v5 = vsel %vm417_vm7, %v837_v4, %v839_v22  ;;  %v847_v44 = vsel %vm417_vm7, %v843_v35, %v837_v4  ;;  %v798_v22 = vmul.f32 %v790_v52, %v786_v61  ;;  %v760_v35 = vperm.slane %v1491_v46, 0  ;;  %v634_v4 = vld [vmem:[%s1625_s1] ss:$8 sm:$0xf] }
 0x312   :  { %938 = vmatpush.msrb.mxu1 %v1408_v19  ;;  %v858_v6 = vmul.f32 %v850_v63, %v846_v5  ;;  %v861_v7 = vmul.f32 %v853_v1, %v847_v44  ;;  %v866_v61 = vld [vmem:[%s1629_s3] sm:$0xff] }
 0x314   :  { %914 = vmatpush.msrb.mxu0 %v858_v6  ;;  %974 = vmatpush.msrb.mxu3 %v861_v7 }
 0x317   :  { %v1514_v9 = vpop.permute.xlu0 %684  ;;  %v627_v55 = vpop.permute.xlu2 %626 }
 0x318   :  { %v783_v10 = vpop.permute.xlu1 %782 }
 0x319   :  { %v784_v47 = vsel %vm319_vm6, %v781_v26, %v783_v10  ;;  %v787_v2 = vsel %vm319_vm6, %v783_v10, %v777_v24  ;;  %v762_v24 = vperm.slane %v1491_v46, 2  ;;  %v639_v10 = vperm.slane %v634_v4, 3 }
 0x31a   :  { %v800_v11 = vmul.f32 %v792_v8, %v784_v47  ;;  %v801_v23 = vmul.f32 %v793_v15, %v787_v2  ;;  %v638_v15 = vperm.slane %v634_v4, 2 }
 0x31c   :  { %956 = vmatpush.msrb.mxu2 %v800_v11 }
 0x31f   :  { %v1518_v14 = vpop.permute.xlu0 %654  ;;  %v629_v5 = vpop.permute.xlu2 %628 }
 0x320   :  { %v807_v41 = vpop.permute.xlu1 %806  ;;  %v630_v47 = vsel %vm54_vm0, %v627_v55, %v629_v5 }
 0x321   :  { %v816_v17 = vsel %vm362_vm5, %v807_v41, %v809_v45  ;;  %v817_v18 = vsel %vm362_vm5, %v1467_v0, %v807_v41  ;;  %v726_v45 = vperm.slane %v1068_v21, 0  ;;  %v647_v52 = vmul.f32 %v639_v10, %v630_v47  ;;  %v988_v10 = vld [vmem:[%s1631_s7] sm:$0xff] }
 0x322   :  { %v828_v19 = vmul.f32 %v820_v12, %v816_v17  ;;  %v831_v20 = vmul.f32 %v823_v13, %v817_v18 }
 0x324   :  { %915 = vmatpush.msrb.mxu0 %v828_v19  ;;  %975 = vmatpush.msrb.mxu3 %v831_v20 }
 0x326   :  { %916 = vmatpush.msrb.mxu0 %v798_v22  ;;  %976 = vmatpush.msrb.mxu3 %v801_v23 }
 0x327   :  { %v713_v26 = vpop.permute.xlu0 %712 }
 0x328   :  { %v722_v0 = vsel %vm194_vm2, %v713_v26, %v1507_v3  ;;  %v753_v28 = vpop.permute.xlu1 %752 }
 0x329   :  { %v754_v29 = vsel %vm264_vm4, %v1478_v33, %v753_v28  ;;  %v735_v30 = vmul.f32 %v727_v25, %v722_v0 }
 0x32a   :  { %v770_v31 = vmul.f32 %v762_v24, %v754_v29 }
 0x32b   :  { %939 = vmatpush.msrb.mxu1 %v735_v30 }
 0x32c   :  { %957 = vmatpush.msrb.mxu2 %v770_v31 }
 0x32e   :  { %958 = vmatpush.msrb.mxu2 %v1398_v38  ;;  %v723_v38 = vsel %vm194_vm2, %v719_v27, %v713_v26 }
 0x32f   :  { %v734_v46 = vmul.f32 %v726_v45, %v723_v38  ;;  %v659_v7 = vpop.permute.xlu0 %658 }
 0x330   :  { %v747_v37 = vpop.permute.xlu1 %746 }
 0x331   :  { %v756_v39 = vsel %vm264_vm4, %v747_v37, %v1493_v48  ;;  %v757_v40 = vsel %vm264_vm4, %v753_v28, %v747_v37  ;;  %v729_v48 = vperm.slane %v1068_v21, 3 }
 0x332   :  { %v768_v33 = vmul.f32 %v760_v35, %v756_v39  ;;  %v771_v43 = vmul.f32 %v763_v36, %v757_v40  ;;  %v637_v35 = vperm.slane %v634_v4, 1 }
 0x334   :  { %917 = vmatpush.msrb.mxu0 %v768_v33  ;;  %977 = vmatpush.msrb.mxu3 %v771_v43 }
 0x336   :  { %918 = vmatpush.msrb.mxu0 %v1417_v62  ;;  %978 = vmatpush.msrb.mxu3 %v1400_v16  ;;  %v1067_v62 = vld [vmem:[%s1625_s1 + $0x2] ss:$8 sm:$0xf] }
 0x337   :  { %v698_v16 = vperm.slane %v1067_v62, 2  ;;  %v699_v57 = vperm.slane %v1067_v62, 3  ;;  %v653_v19 = vpop.permute.xlu0 %652  ;;  %v696_v20 = vperm.slane %v1067_v62, 0  ;;  %v697_v21 = vperm.slane %v1067_v62, 1 }
 0x338   :  { %919 = vmatpush.msrb.mxu0 %v734_v46  ;;  %v717_v49 = vpop.permute.xlu1 %716  ;;  %v662_v24 = vsel %vm96_vm1, %v653_v19, %v1518_v14  ;;  %v663_v26 = vsel %vm96_vm1, %v659_v7, %v653_v19 }
 0x339   :  { %v720_v50 = vsel %vm194_vm2, %v717_v49, %v719_v27  ;;  %v721_v51 = vsel %vm194_vm2, %v1507_v3, %v717_v49  ;;  %v1066_v3 = vld [vmem:[%s1625_s1 + $0x1] ss:$8 sm:$0xf] }
 0x33a   :  { %v736_v53 = vmul.f32 %v728_v32, %v721_v51  ;;  %v737_v54 = vmul.f32 %v729_v48, %v720_v50  ;;  %v668_v44 = vperm.slane %v1066_v3, 2  ;;  %v669_v6 = vperm.slane %v1066_v3, 3 }
 0x33b   :  { %v666_v23 = vperm.slane %v1066_v3, 0  ;;  %v667_v25 = vperm.slane %v1066_v3, 1 }
 0x33c   :  { %959 = vmatpush.msrb.mxu2 %v736_v53  ;;  %979 = vmatpush.msrb.mxu3 %v737_v54 }
 0x33d   :  { %v674_v30 = vmul.f32 %v666_v23, %v663_v26  ;;  %v675_v31 = vmul.f32 %v667_v25, %v662_v24 }
 0x340   :  { %v687_v58 = vpop.permute.xlu1 %686 }
 0x341   :  { %v690_v59 = vsel %vm151_vm3, %v687_v58, %v1547_v34  ;;  %v691_v60 = vsel %vm151_vm3, %v1514_v9, %v687_v58 }
 0x342   :  { %v706_v63 = vmul.f32 %v698_v16, %v691_v60  ;;  %v707_v1 = vmul.f32 %v699_v57, %v690_v59 }
 0x344   :  { %960 = vmatpush.msrb.mxu2 %v706_v63  ;;  %980 = vmatpush.msrb.mxu3 %v707_v1 }
 0x348   :  { %v657_v8 = vpop.permute.xlu1 %656 }
 0x349   :  { %v660_v11 = vsel %vm96_vm1, %v657_v8, %v659_v7  ;;  %v661_v12 = vsel %vm96_vm1, %v1518_v14, %v657_v8  ;;  %v636_v14 = vperm.slane %v634_v4, 0 }
 0x34a   :  { %v676_v13 = vmul.f32 %v668_v44, %v661_v12  ;;  %v677_v41 = vmul.f32 %v669_v6, %v660_v11  ;;  %v987_v44 = vld [vmem:[%s1630_s6] sm:$0xff] }
 0x34c   :  { %961 = vmatpush.msrb.mxu2 %v676_v13  ;;  %981 = vmatpush.msrb.mxu3 %v677_v41 }
 0x34e   :  { %982 = vmatpush.msrb.mxu3 %v647_v52 }
 0x34f   :  { %1076 = vmatmul.msk.f32.vlgmr.msrb.gmra.mxu3 %vm903_vm14, %v866_v61 }
 0x350   :  { %v625_v2 = vpop.permute.xlu1 %624 }
 0x351   :  { %v631_v17 = vsel %vm54_vm0, %v625_v2, %v627_v55 }
 0x352   :  { %v646_v18 = vmul.f32 %v638_v15, %v631_v17 }
 0x354   :  { %962 = vmatpush.msrb.mxu2 %v646_v18 }
 0x355   :  { %1075 = vmatmul.msk.f32.vlgmr.msrb.gmra.mxu2 %vm903_vm14, %v866_v61 }
 0x358   :  { %v683_v22 = vpop.permute.xlu1 %682 }
 0x359   :  { %v692_v27 = vsel %vm151_vm3, %v683_v22, %v1514_v9  ;;  %v693_v0 = vsel %vm151_vm3, %v1547_v34, %v683_v22 }
 0x35a   :  { %v704_v28 = vmul.f32 %v696_v20, %v693_v0  ;;  %v705_v29 = vmul.f32 %v697_v21, %v692_v27 }
 0x35c   :  { %920 = vmatpush.msrb.mxu0 %v704_v28  ;;  %940 = vmatpush.msrb.mxu1 %v705_v29 }
 0x35e   :  { %921 = vmatpush.msrb.mxu0 %v674_v30  ;;  %941 = vmatpush.msrb.mxu1 %v675_v31 }
 0x360   :  { %v623_v36 = vpop.permute.xlu1 %622 }
 0x361   :  { %v632_v37 = vsel %vm54_vm0, %v623_v36, %v625_v2  ;;  %v633_v9 = vsel %vm54_vm0, %v629_v5, %v623_v36 }
 0x362   :  { %v644_v39 = vmul.f32 %v636_v14, %v633_v9  ;;  %v645_v40 = vmul.f32 %v637_v35, %v632_v37 }
 0x364   :  { %922 = vmatpush.msrb.mxu0 %v644_v39  ;;  %942 = vmatpush.msrb.mxu1 %v645_v40 }
 0x365   :  { %1073 = vmatmul.msk.f32.vlgmr.msrb.gmra.mxu0 %vm903_vm14, %v866_v61  ;;  %1074 = vmatmul.msk.f32.vlgmr.msrb.gmra.mxu1 %vm903_vm14, %v866_v61 }
 0x3d2   :  { %v984_v33 = vpop.f32.mrf.mxu3 }
 0x3d3   :  { %v998_v42 = vmul.f32 %v984_v33, %v984_v33 }
 0x3d8   :  { %v964_v34 = vpop.f32.mrf.mxu2 }
 0x3d9   :  { %v997_v48 = vmul.f32 %v964_v34, %v964_v34 }
 0x3e2   :  { %v924_v43 = vpop.f32.mrf.mxu0  ;;  %v944_v45 = vpop.f32.mrf.mxu1 }
 0x3e3   :  { %v995_v38 = vmul.f32 %v924_v43, %v924_v43  ;;  %v989_v46 = vadd.f32 %v944_v45, %v924_v43  ;;  %v996_v32 = vmul.f32 %v944_v45, %v944_v45 }
 0x3e5   :  { %v999_v49 = vadd.f32 %v996_v32, %v995_v38  ;;  %v990_v50 = vadd.f32 %v989_v46, %v964_v34 }
 0x3e7   :  { %v991_v51 = vadd.f32 %v990_v50, %v984_v33  ;;  %v1000_v53 = vadd.f32 %v999_v49, %v997_v48 }
 0x3e9   :  { %992 = vadd.xlane.f32.xlu2 %v991_v51  ;;  %v1001_v54 = vadd.f32 %v1000_v53, %v998_v42 }
 0x3eb   :  { %1002 = vadd.xlane.f32.xlu0 %v1001_v54 }
 0x45c   :  { %v993_v62 = vpop.xlane.xlu2 %992 }
 0x45d   :  { %v994_v55 = vmul.f32 %v993_v62, %v1388_v56 }
 0x45e   :  { %v1003_v16 = vpop.xlane.xlu0 %1002 }
 0x45f   :  { %v1005_v57 = vmul.f32 %v994_v55, %v994_v55  ;;  %v1004_v58 = vmul.f32 %v1003_v16, %v1388_v56 }
 0x461   :  { %v1006_v59 = vsub.f32 %v1004_v58, %v1005_v57 }
 0x463   :  { %v1007_v60 = vadd.f32 1e-05, %v1006_v59 }
 0x465   :  { %1093 = vrsqrt.f32 %v1007_v60  ;;  %vm1014_vm0 = vweird.f32 %v1007_v60 }
 0x46b   :  { %v1094_v63 = vpop.eup %1093 }
 0x46c   :  { %v1009_v1 = vmul.f32 %v1094_v63, %v1007_v60  ;;  %vm1015_vm15 = vweird.f32 %v1094_v63 }
 0x46d   :  { %vm1016_vm1 = vmor %vm1014_vm0, %vm1015_vm15 }
 0x46e   :  { %v1010_v3 = vmul.f32 %v1094_v63, %v1009_v1 }
 0x470   :  { %v1011_v4 = vmul.f32 0.5, %v1010_v3 }
 0x472   :  { %v1012_v5 = vsub.f32 1.5, %v1011_v4 }
 0x474   :  { %v1013_v6 = vmul.f32 %v1094_v63, %v1012_v5 }
 0x476   :  { %v1017_v7 = vsel %vm1016_vm1, %v1094_v63, %v1013_v6 }
 0x477   :  { %v1018_v8 = vmul.f32 %v1017_v7, %v987_v44 }
 0x479   :  { %1023 = vperm.xlu1 %1087, %v1018_v8   ;;  %v1019_v56 = vmul.f32 %v1018_v8, %v994_v55 }
 0x47b   :  { %v1020_v47 = vsub.f32 %v988_v10, %v1019_v56 }
 0x481   :  { %1032 = vperm.xlu1 %1087, %v1020_v47  }
 0x4eb   :  { %v1024_v11 = vpop.permute.xlu1 %1023 }
 0x4ec   :  { %v1026_v12 = vmul.f32 %v1024_v11, %v924_v43  ;;  %v1027_v13 = vmul.f32 %v1024_v11, %v944_v45  ;;  %v1028_v41 = vmul.f32 %v1024_v11, %v964_v34  ;;  %v1029_v52 = vmul.f32 %v1024_v11, %v984_v33 }
 0x4f3   :  { %v1033_v15 = vpop.permute.xlu1 %1032 }
 0x4f4   :  { %v1035_v61 = vadd.f32 %v1033_v15, %v1026_v12  ;;  %v1036_v2 = vadd.f32 %v1033_v15, %v1027_v13  ;;  %v1037_v17 = vadd.f32 %v1033_v15, %v1028_v41  ;;  %v1038_v18 = vadd.f32 %v1033_v15, %v1029_v52 }
 0x4f6   :  { %v1039_v19 = vmax.f32 %v1035_v61, 0.0  ;;  %v1040_v20 = vmax.f32 %v1036_v2, 0.0  ;;  %v1041_v21 = vmax.f32 %v1037_v17, 0.0  ;;  %v1042_v22 = vmax.f32 %v1038_v18, 0.0 }
 0x4f8   :  { %1043 = vst [vmem:[%s1632_s8] sm:$0xff] %v1039_v19 }
 0x4f9   :  { %1044 = vst [vmem:[%s1632_s8 + $0x8] sm:$0xff] %v1040_v20 }
 0x4fa   :  { %1045 = vst [vmem:[%s1632_s8 + $0x10] sm:$0xff] %v1041_v21 }
 0x4fb   :  { %1046 = vst [vmem:[%s1632_s8 + $0x18] sm:$0xff] %v1042_v22 }

</bundles_post_ra>
